<compile_context>
chip_gen: v5e
topology: v5e:2x2
jax: 0.10.0
libtpu: 0.0.40
codegen_flags: <defaults>
</compile_context>

<pallas_src>
import math
import functools

import jax
import jax.numpy as jnp
from jax.experimental import pallas as pl
from jax.experimental.pallas import tpu as pltpu


def pma_kernel(q_ref, x_ref, wkv_ref, bkv_ref, wo_ref, bo_ref,
               o_ref, o_acc,
               *, num_heads, dim_V, n_keys, block_b, compute_dtype):
    """One tile of `block_b` batch elements per grid step.

    q_ref   : (num_seeds, dim_V)          precomputed Q projection (batch-invariant, f32)
    x_ref   : (block_b, N, dim)           batch tile of the input set (compute_dtype)
    wkv_ref : (dim, 2*dim_V)              fused [Wk | Wv] weights (compute_dtype)
    bkv_ref : (1, 2*dim_V)                fused [bk | bv] biases (f32)
    wo_ref  : (dim_V, dim_V), bo_ref: (1, dim_V)
    o_ref   : (block_b, num_seeds*dim_V)  lane-dense output slab
    o_acc   : VMEM scratch (block_b, num_seeds, dim_V) f32 per-head output slab
    """
    Bt = block_b
    S = q_ref.shape[0]
    d_head = dim_V // num_heads
    scale = 1.0 / math.sqrt(dim_V)          # PyTorch scales by sqrt(dim_V), not sqrt(d_head)
    cdt = compute_dtype

    # --- fused K/V projection: ONE full-width MXU matmul over the whole batch tile.
    Xf = x_ref[...].reshape(Bt * n_keys, x_ref.shape[-1])                     # (Bt*N, dim)
    KV = jnp.dot(Xf, wkv_ref[...], preferred_element_type=jnp.float32) + bkv_ref[...]
    K3 = KV[:, :dim_V].reshape(Bt, n_keys, dim_V).astype(cdt)                 # (Bt, N, dim_V)
    V3 = KV[:, dim_V:].reshape(Bt, n_keys, dim_V).astype(cdt)

    q = q_ref[...]                                                            # (S, dim_V) f32
    # Single hoisted broadcast of the pre-scaled Q (scaling q once, not per-score-block).
    qs_b = jnp.broadcast_to((q * scale).astype(cdt)[None], (Bt, S, dim_V))    # (Bt, S, dim_V)

    # --- per-head attention (static unrolled loop, flash-style 3-D einsums).
    # Each head writes its (Bt, S, d_head) result into the scratch slab at its
    # lane offset; no concat, per-head temps die immediately.
    for h in range(num_heads):
        sl = slice(h * d_head, (h + 1) * d_head)
        sc = jnp.einsum("bsd,bnd->bsn", qs_b[:, :, sl], K3[:, :, sl],
                        preferred_element_type=jnp.float32)                   # (Bt, S, N) f32
        m = jnp.max(sc, axis=-1, keepdims=True)
        e = jnp.exp(sc - m)                                                   # f32 softmax
        l = jnp.sum(e, axis=-1, keepdims=True)
        a = (e * pl.reciprocal(l, approx=True)).astype(cdt)                   # EUP divide
        o_acc[:, :, sl] = jnp.einsum("bsn,bnd->bsd", a, V3[:, :, sl],
                                     preferred_element_type=jnp.float32)

    # --- +Q residual applied once on the full slab.
    O = o_acc[...] + q[None]                                                  # (Bt, S, dim_V) f32

    # --- fc_o + ReLU residual directly on the 3-D slab (no (Bt*S, dim_V) relayout).
    proj = jnp.einsum("bsd,de->bse", O.astype(cdt), wo_ref[...],
                      preferred_element_type=jnp.float32) + bo_ref[...]
    O = O + jnp.maximum(proj, 0.0)

    # Lane-dense store: single reshape to (Bt, S*dim_V) avoids masked partial stores.
    o_ref[...] = O.reshape(Bt, S * dim_V).astype(o_ref.dtype)


def _pick_block_b(B, N, dim, dim_V, num_seeds, itemsize,
                  target_rows=1024, vmem_budget_bytes=16 << 20):
    """Pick an 8-aligned batch tile (or the whole batch).

    - block_b must be a multiple of 8 or equal B: the output block's
      second-minor dim must satisfy the (8,128) rule.
    - Targets ~`target_rows` rows of Bt*N for the fused K/V projection matmul
      (amortizes the ~0.35us per-grid-step overhead).
    - Caps the tile so the f32 intermediates fit a conservative VMEM budget
      (sized for v7x's 64 MiB physical / 32 MiB scoped default).
    - Prefers >=2 grid steps so v7x's two TensorCores both get work.
    """
    per_b = (2 * N * dim * itemsize                 # double-buffered X tile
             + N * 2 * dim_V * (4 + itemsize)       # fused KV f32 accum + compute copy
             + num_seeds * dim_V * 4 * 3            # o_acc slab + O/proj temps
             + num_seeds * N * 4 * 3)               # score/softmax temps (per head, reused)
    cap = max(1, vmem_budget_bytes // max(per_b, 1))
    target = max(1, min(target_rows // max(N, 1), cap))

    cands = [d for d in range(8, B + 1, 8) if B % d == 0]
    if not cands:
        return B                                    # no 8-aligned divisor: whole batch
    multi = [d for d in cands if 2 * d <= B] or cands   # keep >=2 grid steps if possible
    fit = [d for d in multi if d <= target] or [min(multi)]
    return max(fit)


def pma_forward(S, X, params, num_heads, *, block_b=None,
                compute_dtype=jnp.bfloat16):
    """S: (num_seeds, dim), X: (B, N, dim) -> (B, num_seeds, dim_V)."""
    B, N, dim = X.shape
    num_seeds = S.shape[0]
    dim_V = params["wq"].shape[1]
    out_dtype = X.dtype

    # Batch-invariant Q projection, hoisted out of the kernel (computed once, f32).
    q = (jnp.dot(S, params["wq"]) + params["bq"]).astype(jnp.float32)

    # Fuse Wk|Wv and bk|bv so the kernel does one projection matmul.
    wkv = jnp.concatenate([params["wk"], params["wv"]], axis=1).astype(compute_dtype)
    bkv = jnp.concatenate([params["bk"], params["bv"]], axis=1).astype(jnp.float32)
    wo = params["wo"].astype(compute_dtype)
    bo = params["bo"].astype(jnp.float32)
    Xc = X.astype(compute_dtype)   # bf16 halves the dominant X HBM->VMEM DMA

    if block_b is None:
        block_b = _pick_block_b(B, N, dim, dim_V, num_seeds,
                                jnp.dtype(compute_dtype).itemsize)
    assert B % block_b == 0, "block_b must divide the batch size"
    grid = (B // block_b,)

    kernel = functools.partial(pma_kernel, num_heads=num_heads, dim_V=dim_V,
                               n_keys=N, block_b=block_b, compute_dtype=compute_dtype)
    full = lambda shape: pl.BlockSpec(shape, lambda g, _s=shape: (0,) * len(_s))

    # TODO(synk): for very large N, add a second ("arbitrary") grid axis over key
    # tiles with flash-style online-softmax (m/l/acc) scratch so K/V/score temps
    # stay bounded in VMEM (v7x has only 64 MiB) instead of growing with N.
    out_flat = pl.pallas_call(
        kernel,
        out_shape=jax.ShapeDtypeStruct((B, num_seeds * dim_V), out_dtype),
        grid=grid,
        in_specs=[
            full((num_seeds, dim_V)),                               # q (shared)
            pl.BlockSpec((block_b, N, dim), lambda g: (g, 0, 0)),   # X batch tile
            full((dim, 2 * dim_V)), full((1, 2 * dim_V)),           # fused Wkv, bkv
            full((dim_V, dim_V)), full((1, dim_V)),                 # Wo, bo
        ],
        out_specs=pl.BlockSpec((block_b, num_seeds * dim_V), lambda g: (g, 0)),
        scratch_shapes=[pltpu.VMEM((block_b, num_seeds, dim_V), jnp.float32)],
        compiler_params=pltpu.CompilerParams(
            dimension_semantics=("parallel",),
            vmem_limit_bytes=64 << 20),
    )(q, Xc, wkv, bkv, wo, bo)

    return out_flat.reshape(B, num_seeds, dim_V)


def pma_reference(S, X, params, num_heads):
    """Pure-JAX f32 reference mirroring the PyTorch MAB/PMA forward."""
    B, N, dim = X.shape
    dim_V = params["wq"].shape[1]
    num_seeds = S.shape[0]

    Q = jnp.broadcast_to(S[None], (B, num_seeds, dim))
    Qp = Q @ params["wq"] + params["bq"]
    Kp = X @ params["wk"] + params["bk"]
    Vp = X @ params["wv"] + params["bv"]

    ds = dim_V // num_heads
    # torch.cat(t.split(ds, 2), 0): (B, L, V) -> (H*B, L, ds) with head-major stacking
    split_heads = lambda t: jnp.concatenate(
        [t[..., h * ds:(h + 1) * ds] for h in range(num_heads)], axis=0)
    Q_, K_, V_ = split_heads(Qp), split_heads(Kp), split_heads(Vp)

    A = jax.nn.softmax(jnp.einsum("bsd,bnd->bsn", Q_, K_) / math.sqrt(dim_V), axis=-1)
    O_ = Q_ + jnp.einsum("bsn,bnd->bsd", A, V_)
    # cat(split(B, 0), 2): back to (B, num_seeds, dim_V)
    O = jnp.concatenate([O_[h * B:(h + 1) * B] for h in range(num_heads)], axis=-1)

    O = O + jax.nn.relu(O @ params["wo"] + params["bo"])
    return O


if __name__ == "__main__":
    # Small, module-consistent shapes (num_seeds*dim_V = 128 -> lane-dense output).
    B, N, dim = 2, 16, 32
    num_heads, num_seeds = 4, 4
    dim_V = dim

    key = jax.random.PRNGKey(0)
    ks = jax.random.split(key, 12)

    # Seed parameter S (xavier-uniform style deterministic init).
    bound_s = math.sqrt(6.0 / (num_seeds + dim))
    S = jax.random.uniform(ks[0], (num_seeds, dim), jnp.float32, -bound_s, bound_s)

    def linear_init(kw, kb, fan_in, fan_out):
        bound = 1.0 / math.sqrt(fan_in)
        w = jax.random.uniform(kw, (fan_in, fan_out), jnp.float32, -bound, bound)
        b = jax.random.uniform(kb, (1, fan_out), jnp.float32, -bound, bound)
        return w, b

    wq, bq = linear_init(ks[1], ks[2], dim, dim_V)
    wk, bk = linear_init(ks[3], ks[4], dim, dim_V)
    wv, bv = linear_init(ks[5], ks[6], dim, dim_V)
    wo, bo = linear_init(ks[7], ks[8], dim_V, dim_V)
    params = dict(wq=wq, bq=bq, wk=wk, bk=bk, wv=wv, bv=bv, wo=wo, bo=bo)

    X = jax.random.normal(ks[9], (B, N, dim), jnp.float32)

    ref = pma_reference(S, X, params, num_heads)

    # Default path: bf16 MXU operands (f32 accumulation / f32 softmax).
    out_bf16 = jax.block_until_ready(pma_forward(S, X, params, num_heads))
    assert out_bf16.shape == (B, num_seeds, dim_V)
    assert jnp.allclose(out_bf16, ref, atol=5e-2, rtol=5e-2), \
        "Pallas bf16 output mismatch vs reference"

    # f32 compute path (only the EUP approximate softmax reciprocal deviates).
    out_f32 = jax.block_until_ready(
        pma_forward(S, X, params, num_heads, compute_dtype=jnp.float32))
    assert jnp.allclose(out_f32, ref, atol=5e-3, rtol=5e-3), \
        "Pallas f32 output mismatch vs reference"

    print("KERNEL_OK")
</pallas_src>

<mosaic_0001>
module attributes {stable_mosaic.version = 11 : i64} {
  func.func @pma_kernel(%arg0: i32, %arg1: memref<4x32xf32, #tpu.memory_space<vmem>>, %arg2: memref<2x16x32xbf16, #tpu.memory_space<vmem>>, %arg3: memref<32x64xbf16, #tpu.memory_space<vmem>>, %arg4: memref<1x64xf32, #tpu.memory_space<vmem>>, %arg5: memref<32x32xbf16, #tpu.memory_space<vmem>>, %arg6: memref<1x32xf32, #tpu.memory_space<vmem>>, %arg7: memref<2x128xf32, #tpu.memory_space<vmem>>, %arg8: memref<2x4x32xf32, #tpu.memory_space<vmem>>) attributes {dimension_semantics = [#tpu.dimension_semantics<parallel>], iteration_bounds = array<i64: 1>, scalar_prefetch = 0 : i64, scratch_operands = 1 : i64, tpu.core_type = #tpu.core_type<tc>, window_params = [{pipeline_mode = #tpu.pipeline_mode<synchronous>, transform_indices = @transform_0, window_bounds = array<i64: 4, 32>}, {transform_indices = @transform_1, window_bounds = array<i64: 2, 16, 32>}, {pipeline_mode = #tpu.pipeline_mode<synchronous>, transform_indices = @transform_2, window_bounds = array<i64: 32, 64>}, {pipeline_mode = #tpu.pipeline_mode<synchronous>, transform_indices = @transform_3, window_bounds = array<i64: 1, 64>}, {pipeline_mode = #tpu.pipeline_mode<synchronous>, transform_indices = @transform_4, window_bounds = array<i64: 32, 32>}, {pipeline_mode = #tpu.pipeline_mode<synchronous>, transform_indices = @transform_5, window_bounds = array<i64: 1, 32>}, {transform_indices = @transform_6, window_bounds = array<i64: 2, 128>}]} {
    %c0 = arith.constant 0 : index
    %c0_0 = arith.constant 0 : index
    %c0_1 = arith.constant 0 : index
    %0 = vector.load %arg2[%c0, %c0_0, %c0_1] : memref<2x16x32xbf16, #tpu.memory_space<vmem>>, vector<2x16x32xbf16>
    %1 = vector.shape_cast %0 : vector<2x16x32xbf16> to vector<32x32xbf16>
    %c0_2 = arith.constant 0 : index
    %c0_3 = arith.constant 0 : index
    %2 = vector.load %arg3[%c0_2, %c0_3] : memref<32x64xbf16, #tpu.memory_space<vmem>>, vector<32x64xbf16>
    %cst = arith.constant dense<0.000000e+00> : vector<32x64xf32>
    %3 = tpu.matmul %1, %2, %cst {dimension_numbers = #tpu.dot_dimension_numbers<[1], [0], [0], [1], [0, 0, 1, 1], [], []>} : vector<32x32xbf16>, vector<32x64xbf16>, vector<32x64xf32> -> vector<32x64xf32>
    %c0_4 = arith.constant 0 : index
    %c0_5 = arith.constant 0 : index
    %4 = vector.load %arg4[%c0_4, %c0_5] : memref<1x64xf32, #tpu.memory_space<vmem>>, vector<1x64xf32>
    %5 = vector.broadcast %4 : vector<1x64xf32> to vector<32x64xf32>
    %6 = arith.addf %3, %5 : vector<32x64xf32>
    %7 = vector.extract_strided_slice %6 {offsets = [0, 0], sizes = [32, 32], strides = [1, 1]} : vector<32x64xf32> to vector<32x32xf32>
    %8 = vector.shape_cast %7 : vector<32x32xf32> to vector<2x16x32xf32>
    %9 = arith.truncf %8 : vector<2x16x32xf32> to vector<2x16x32xbf16>
    %10 = vector.extract_strided_slice %6 {offsets = [0, 32], sizes = [32, 32], strides = [1, 1]} : vector<32x64xf32> to vector<32x32xf32>
    %11 = vector.shape_cast %10 : vector<32x32xf32> to vector<2x16x32xf32>
    %12 = arith.truncf %11 : vector<2x16x32xf32> to vector<2x16x32xbf16>
    %c0_6 = arith.constant 0 : index
    %c0_7 = arith.constant 0 : index
    %13 = vector.load %arg1[%c0_6, %c0_7] : memref<4x32xf32, #tpu.memory_space<vmem>>, vector<4x32xf32>
    %cst_8 = arith.constant 0.176776692 : f32
    %14 = vector.broadcast %cst_8 : f32 to vector<4x32xf32>
    %15 = arith.mulf %13, %14 : vector<4x32xf32>
    %16 = arith.truncf %15 : vector<4x32xf32> to vector<4x32xbf16>
    %17 = vector.shape_cast %16 : vector<4x32xbf16> to vector<1x4x32xbf16>
    %18 = vector.shape_cast %17 : vector<1x4x32xbf16> to vector<1x4x32xbf16>
    %19 = vector.broadcast %18 : vector<1x4x32xbf16> to vector<2x4x32xbf16>
    %20 = vector.extract_strided_slice %19 {offsets = [0, 0, 0], sizes = [2, 4, 8], strides = [1, 1, 1]} : vector<2x4x32xbf16> to vector<2x4x8xbf16>
    %21 = vector.extract_strided_slice %9 {offsets = [0, 0, 0], sizes = [2, 16, 8], strides = [1, 1, 1]} : vector<2x16x32xbf16> to vector<2x16x8xbf16>
    "tpu.trace_start"() <{level = 10 : i32, message = "bsd,bnd->bsn"}> : () -> ()
    %cst_9 = arith.constant dense<0.000000e+00> : vector<2x4x16xf32>
    %22 = tpu.matmul %20, %21, %cst_9 {dimension_numbers = #tpu.dot_dimension_numbers<[2], [2], [1], [1], [0, 0, 0, 1, 1, 1], [0], [0]>} : vector<2x4x8xbf16>, vector<2x16x8xbf16>, vector<2x4x16xf32> -> vector<2x4x16xf32>
    "tpu.trace_stop"() : () -> ()
    %cst_10 = arith.constant dense<0xFF800000> : vector<2x4xf32>
    %23 = vector.multi_reduction <maximumf>, %22, %cst_10 [2] : vector<2x4x16xf32> to vector<2x4xf32>
    %24 = vector.shape_cast %23 : vector<2x4xf32> to vector<2x4x1xf32>
    %25 = vector.broadcast %24 : vector<2x4x1xf32> to vector<2x4x16xf32>
    %26 = arith.subf %22, %25 : vector<2x4x16xf32>
    %27 = math.exp %26 : vector<2x4x16xf32>
    %cst_11 = arith.constant dense<0.000000e+00> : vector<2x4xf32>
    %28 = vector.multi_reduction <add>, %27, %cst_11 [2] : vector<2x4x16xf32> to vector<2x4xf32>
    %29 = vector.shape_cast %28 : vector<2x4xf32> to vector<2x4x1xf32>
    %30 = tpu.reciprocal %29 {approx = true} : vector<2x4x1xf32> -> vector<2x4x1xf32>
    %31 = vector.broadcast %30 : vector<2x4x1xf32> to vector<2x4x16xf32>
    %32 = arith.mulf %27, %31 : vector<2x4x16xf32>
    %33 = arith.truncf %32 : vector<2x4x16xf32> to vector<2x4x16xbf16>
    %34 = vector.extract_strided_slice %12 {offsets = [0, 0, 0], sizes = [2, 16, 8], strides = [1, 1, 1]} : vector<2x16x32xbf16> to vector<2x16x8xbf16>
    "tpu.trace_start"() <{level = 10 : i32, message = "bsn,bnd->bsd"}> : () -> ()
    %cst_12 = arith.constant dense<0.000000e+00> : vector<2x4x8xf32>
    %35 = tpu.matmul %33, %34, %cst_12 {dimension_numbers = #tpu.dot_dimension_numbers<[2], [1], [1], [2], [0, 0, 0, 1, 1, 2], [0], [0]>} : vector<2x4x16xbf16>, vector<2x16x8xbf16>, vector<2x4x8xf32> -> vector<2x4x8xf32>
    "tpu.trace_stop"() : () -> ()
    %c0_13 = arith.constant 0 : index
    %c0_14 = arith.constant 0 : index
    %c0_15 = arith.constant 0 : index
    %36 = vector.load %arg8[%c0_13, %c0_14, %c0_15] : memref<2x4x32xf32, #tpu.memory_space<vmem>>, vector<2x4x8xf32>
    tpu.vector_store %arg8[%c0_13, %c0_14, %c0_15], %35 {strides = array<i32>} : memref<2x4x32xf32, #tpu.memory_space<vmem>>, vector<2x4x8xf32>,
    %37 = vector.extract_strided_slice %19 {offsets = [0, 0, 8], sizes = [2, 4, 8], strides = [1, 1, 1]} : vector<2x4x32xbf16> to vector<2x4x8xbf16>
    %38 = vector.extract_strided_slice %9 {offsets = [0, 0, 8], sizes = [2, 16, 8], strides = [1, 1, 1]} : vector<2x16x32xbf16> to vector<2x16x8xbf16>
    "tpu.trace_start"() <{level = 10 : i32, message = "bsd,bnd->bsn"}> : () -> ()
    %cst_16 = arith.constant dense<0.000000e+00> : vector<2x4x16xf32>
    %39 = tpu.matmul %37, %38, %cst_16 {dimension_numbers = #tpu.dot_dimension_numbers<[2], [2], [1], [1], [0, 0, 0, 1, 1, 1], [0], [0]>} : vector<2x4x8xbf16>, vector<2x16x8xbf16>, vector<2x4x16xf32> -> vector<2x4x16xf32>
    "tpu.trace_stop"() : () -> ()
    %cst_17 = arith.constant dense<0xFF800000> : vector<2x4xf32>
    %40 = vector.multi_reduction <maximumf>, %39, %cst_17 [2] : vector<2x4x16xf32> to vector<2x4xf32>
    %41 = vector.shape_cast %40 : vector<2x4xf32> to vector<2x4x1xf32>
    %42 = vector.broadcast %41 : vector<2x4x1xf32> to vector<2x4x16xf32>
    %43 = arith.subf %39, %42 : vector<2x4x16xf32>
    %44 = math.exp %43 : vector<2x4x16xf32>
    %cst_18 = arith.constant dense<0.000000e+00> : vector<2x4xf32>
    %45 = vector.multi_reduction <add>, %44, %cst_18 [2] : vector<2x4x16xf32> to vector<2x4xf32>
    %46 = vector.shape_cast %45 : vector<2x4xf32> to vector<2x4x1xf32>
    %47 = tpu.reciprocal %46 {approx = true} : vector<2x4x1xf32> -> vector<2x4x1xf32>
    %48 = vector.broadcast %47 : vector<2x4x1xf32> to vector<2x4x16xf32>
    %49 = arith.mulf %44, %48 : vector<2x4x16xf32>
    %50 = arith.truncf %49 : vector<2x4x16xf32> to vector<2x4x16xbf16>
    %51 = vector.extract_strided_slice %12 {offsets = [0, 0, 8], sizes = [2, 16, 8], strides = [1, 1, 1]} : vector<2x16x32xbf16> to vector<2x16x8xbf16>
    "tpu.trace_start"() <{level = 10 : i32, message = "bsn,bnd->bsd"}> : () -> ()
    %cst_19 = arith.constant dense<0.000000e+00> : vector<2x4x8xf32>
    %52 = tpu.matmul %50, %51, %cst_19 {dimension_numbers = #tpu.dot_dimension_numbers<[2], [1], [1], [2], [0, 0, 0, 1, 1, 2], [0], [0]>} : vector<2x4x16xbf16>, vector<2x16x8xbf16>, vector<2x4x8xf32> -> vector<2x4x8xf32>
    "tpu.trace_stop"() : () -> ()
    %c0_20 = arith.constant 0 : index
    %c0_21 = arith.constant 0 : index
    %c8 = arith.constant 8 : index
    %53 = vector.load %arg8[%c0_20, %c0_21, %c8] : memref<2x4x32xf32, #tpu.memory_space<vmem>>, vector<2x4x8xf32>
    tpu.vector_store %arg8[%c0_20, %c0_21, %c8], %52 {strides = array<i32>} : memref<2x4x32xf32, #tpu.memory_space<vmem>>, vector<2x4x8xf32>,
    %54 = vector.extract_strided_slice %19 {offsets = [0, 0, 16], sizes = [2, 4, 8], strides = [1, 1, 1]} : vector<2x4x32xbf16> to vector<2x4x8xbf16>
    %55 = vector.extract_strided_slice %9 {offsets = [0, 0, 16], sizes = [2, 16, 8], strides = [1, 1, 1]} : vector<2x16x32xbf16> to vector<2x16x8xbf16>
    "tpu.trace_start"() <{level = 10 : i32, message = "bsd,bnd->bsn"}> : () -> ()
    %cst_22 = arith.constant dense<0.000000e+00> : vector<2x4x16xf32>
    %56 = tpu.matmul %54, %55, %cst_22 {dimension_numbers = #tpu.dot_dimension_numbers<[2], [2], [1], [1], [0, 0, 0, 1, 1, 1], [0], [0]>} : vector<2x4x8xbf16>, vector<2x16x8xbf16>, vector<2x4x16xf32> -> vector<2x4x16xf32>
    "tpu.trace_stop"() : () -> ()
    %cst_23 = arith.constant dense<0xFF800000> : vector<2x4xf32>
    %57 = vector.multi_reduction <maximumf>, %56, %cst_23 [2] : vector<2x4x16xf32> to vector<2x4xf32>
    %58 = vector.shape_cast %57 : vector<2x4xf32> to vector<2x4x1xf32>
    %59 = vector.broadcast %58 : vector<2x4x1xf32> to vector<2x4x16xf32>
    %60 = arith.subf %56, %59 : vector<2x4x16xf32>
    %61 = math.exp %60 : vector<2x4x16xf32>
    %cst_24 = arith.constant dense<0.000000e+00> : vector<2x4xf32>
    %62 = vector.multi_reduction <add>, %61, %cst_24 [2] : vector<2x4x16xf32> to vector<2x4xf32>
    %63 = vector.shape_cast %62 : vector<2x4xf32> to vector<2x4x1xf32>
    %64 = tpu.reciprocal %63 {approx = true} : vector<2x4x1xf32> -> vector<2x4x1xf32>
    %65 = vector.broadcast %64 : vector<2x4x1xf32> to vector<2x4x16xf32>
    %66 = arith.mulf %61, %65 : vector<2x4x16xf32>
    %67 = arith.truncf %66 : vector<2x4x16xf32> to vector<2x4x16xbf16>
    %68 = vector.extract_strided_slice %12 {offsets = [0, 0, 16], sizes = [2, 16, 8], strides = [1, 1, 1]} : vector<2x16x32xbf16> to vector<2x16x8xbf16>
    "tpu.trace_start"() <{level = 10 : i32, message = "bsn,bnd->bsd"}> : () -> ()
    %cst_25 = arith.constant dense<0.000000e+00> : vector<2x4x8xf32>
    %69 = tpu.matmul %67, %68, %cst_25 {dimension_numbers = #tpu.dot_dimension_numbers<[2], [1], [1], [2], [0, 0, 0, 1, 1, 2], [0], [0]>} : vector<2x4x16xbf16>, vector<2x16x8xbf16>, vector<2x4x8xf32> -> vector<2x4x8xf32>
    "tpu.trace_stop"() : () -> ()
    %c0_26 = arith.constant 0 : index
    %c0_27 = arith.constant 0 : index
    %c16 = arith.constant 16 : index
    %70 = vector.load %arg8[%c0_26, %c0_27, %c16] : memref<2x4x32xf32, #tpu.memory_space<vmem>>, vector<2x4x8xf32>
    tpu.vector_store %arg8[%c0_26, %c0_27, %c16], %69 {strides = array<i32>} : memref<2x4x32xf32, #tpu.memory_space<vmem>>, vector<2x4x8xf32>,
    %71 = vector.extract_strided_slice %19 {offsets = [0, 0, 24], sizes = [2, 4, 8], strides = [1, 1, 1]} : vector<2x4x32xbf16> to vector<2x4x8xbf16>
    %72 = vector.extract_strided_slice %9 {offsets = [0, 0, 24], sizes = [2, 16, 8], strides = [1, 1, 1]} : vector<2x16x32xbf16> to vector<2x16x8xbf16>
    "tpu.trace_start"() <{level = 10 : i32, message = "bsd,bnd->bsn"}> : () -> ()
    %cst_28 = arith.constant dense<0.000000e+00> : vector<2x4x16xf32>
    %73 = tpu.matmul %71, %72, %cst_28 {dimension_numbers = #tpu.dot_dimension_numbers<[2], [2], [1], [1], [0, 0, 0, 1, 1, 1], [0], [0]>} : vector<2x4x8xbf16>, vector<2x16x8xbf16>, vector<2x4x16xf32> -> vector<2x4x16xf32>
    "tpu.trace_stop"() : () -> ()
    %cst_29 = arith.constant dense<0xFF800000> : vector<2x4xf32>
    %74 = vector.multi_reduction <maximumf>, %73, %cst_29 [2] : vector<2x4x16xf32> to vector<2x4xf32>
    %75 = vector.shape_cast %74 : vector<2x4xf32> to vector<2x4x1xf32>
    %76 = vector.broadcast %75 : vector<2x4x1xf32> to vector<2x4x16xf32>
    %77 = arith.subf %73, %76 : vector<2x4x16xf32>
    %78 = math.exp %77 : vector<2x4x16xf32>
    %cst_30 = arith.constant dense<0.000000e+00> : vector<2x4xf32>
    %79 = vector.multi_reduction <add>, %78, %cst_30 [2] : vector<2x4x16xf32> to vector<2x4xf32>
    %80 = vector.shape_cast %79 : vector<2x4xf32> to vector<2x4x1xf32>
    %81 = tpu.reciprocal %80 {approx = true} : vector<2x4x1xf32> -> vector<2x4x1xf32>
    %82 = vector.broadcast %81 : vector<2x4x1xf32> to vector<2x4x16xf32>
    %83 = arith.mulf %78, %82 : vector<2x4x16xf32>
    %84 = arith.truncf %83 : vector<2x4x16xf32> to vector<2x4x16xbf16>
    %85 = vector.extract_strided_slice %12 {offsets = [0, 0, 24], sizes = [2, 16, 8], strides = [1, 1, 1]} : vector<2x16x32xbf16> to vector<2x16x8xbf16>
    "tpu.trace_start"() <{level = 10 : i32, message = "bsn,bnd->bsd"}> : () -> ()
    %cst_31 = arith.constant dense<0.000000e+00> : vector<2x4x8xf32>
    %86 = tpu.matmul %84, %85, %cst_31 {dimension_numbers = #tpu.dot_dimension_numbers<[2], [1], [1], [2], [0, 0, 0, 1, 1, 2], [0], [0]>} : vector<2x4x16xbf16>, vector<2x16x8xbf16>, vector<2x4x8xf32> -> vector<2x4x8xf32>
    "tpu.trace_stop"() : () -> ()
    %c0_32 = arith.constant 0 : index
    %c0_33 = arith.constant 0 : index
    %c24 = arith.constant 24 : index
    %87 = vector.load %arg8[%c0_32, %c0_33, %c24] : memref<2x4x32xf32, #tpu.memory_space<vmem>>, vector<2x4x8xf32>
    tpu.vector_store %arg8[%c0_32, %c0_33, %c24], %86 {strides = array<i32>} : memref<2x4x32xf32, #tpu.memory_space<vmem>>, vector<2x4x8xf32>,
    %c0_34 = arith.constant 0 : index
    %c0_35 = arith.constant 0 : index
    %c0_36 = arith.constant 0 : index
    %88 = vector.load %arg8[%c0_34, %c0_35, %c0_36] : memref<2x4x32xf32, #tpu.memory_space<vmem>>, vector<2x4x32xf32>
    %89 = vector.shape_cast %13 : vector<4x32xf32> to vector<1x4x32xf32>
    %90 = vector.broadcast %89 : vector<1x4x32xf32> to vector<2x4x32xf32>
    %91 = arith.addf %88, %90 : vector<2x4x32xf32>
    %92 = arith.truncf %91 : vector<2x4x32xf32> to vector<2x4x32xbf16>
    %c0_37 = arith.constant 0 : index
    %c0_38 = arith.constant 0 : index
    %93 = vector.load %arg5[%c0_37, %c0_38] : memref<32x32xbf16, #tpu.memory_space<vmem>>, vector<32x32xbf16>
    "tpu.trace_start"() <{level = 10 : i32, message = "bsd,de->bse"}> : () -> ()
    %cst_39 = arith.constant dense<0.000000e+00> : vector<2x4x32xf32>
    %94 = tpu.matmul %92, %93, %cst_39 {dimension_numbers = #tpu.dot_dimension_numbers<[2], [0], [0, 1], [1], [0, 0, 0, 1, 1, 1], [], []>} : vector<2x4x32xbf16>, vector<32x32xbf16>, vector<2x4x32xf32> -> vector<2x4x32xf32>
    "tpu.trace_stop"() : () -> ()
    %c0_40 = arith.constant 0 : index
    %c0_41 = arith.constant 0 : index
    %95 = vector.load %arg6[%c0_40, %c0_41] : memref<1x32xf32, #tpu.memory_space<vmem>>, vector<1x32xf32>
    %96 = vector.shape_cast %95 : vector<1x32xf32> to vector<1x1x32xf32>
    %97 = vector.broadcast %96 : vector<1x1x32xf32> to vector<2x4x32xf32>
    %98 = arith.addf %94, %97 : vector<2x4x32xf32>
    %cst_42 = arith.constant 0.000000e+00 : f32
    %99 = vector.broadcast %cst_42 : f32 to vector<2x4x32xf32>
    %100 = arith.maximumf %98, %99 : vector<2x4x32xf32>
    %101 = arith.addf %91, %100 : vector<2x4x32xf32>
    %102 = vector.shape_cast %101 : vector<2x4x32xf32> to vector<2x128xf32>
    %c0_43 = arith.constant 0 : index
    %c0_44 = arith.constant 0 : index
    %103 = vector.load %arg7[%c0_43, %c0_44] : memref<2x128xf32, #tpu.memory_space<vmem>>, vector<2x128xf32>
    tpu.vector_store %arg7[%c0_43, %c0_44], %102 {strides = array<i32>} : memref<2x128xf32, #tpu.memory_space<vmem>>, vector<2x128xf32>,
    return
  }
  func.func @transform_0(%arg0: i32) -> (i32, i32) {
    %c0_i32 = arith.constant 0 : i32
    %c0_i32_0 = arith.constant 0 : i32
    %c0_i32_1 = arith.constant 0 : i32
    return %c0_i32, %c0_i32_0 : i32, i32
  }
  func.func @transform_1(%arg0: i32) -> (i32, i32, i32) {
    %c0_i32 = arith.constant 0 : i32
    %c0_i32_0 = arith.constant 0 : i32
    %c0_i32_1 = arith.constant 0 : i32
    return %arg0, %c0_i32, %c0_i32_0 : i32, i32, i32
  }
  func.func @transform_2(%arg0: i32) -> (i32, i32) {
    %c0_i32 = arith.constant 0 : i32
    %c0_i32_0 = arith.constant 0 : i32
    %c0_i32_1 = arith.constant 0 : i32
    return %c0_i32, %c0_i32_0 : i32, i32
  }
  func.func @transform_3(%arg0: i32) -> (i32, i32) {
    %c0_i32 = arith.constant 0 : i32
    %c0_i32_0 = arith.constant 0 : i32
    %c0_i32_1 = arith.constant 0 : i32
    return %c0_i32, %c0_i32_0 : i32, i32
  }
  func.func @transform_4(%arg0: i32) -> (i32, i32) {
    %c0_i32 = arith.constant 0 : i32
    %c0_i32_0 = arith.constant 0 : i32
    %c0_i32_1 = arith.constant 0 : i32
    return %c0_i32, %c0_i32_0 : i32, i32
  }
  func.func @transform_5(%arg0: i32) -> (i32, i32) {
    %c0_i32 = arith.constant 0 : i32
    %c0_i32_0 = arith.constant 0 : i32
    %c0_i32_1 = arith.constant 0 : i32
    return %c0_i32, %c0_i32_0 : i32, i32
  }
  func.func @transform_6(%arg0: i32) -> (i32, i32) {
    %c0_i32 = arith.constant 0 : i32
    %c0_i32_0 = arith.constant 0 : i32
    return %arg0, %c0_i32 : i32, i32
  }
}

</mosaic_0001>

<bundles_post_ra>
// kernel: tpu_custom_call.1
= control target key start
LH: loop header
LB: loop body
LE: loop exit
PB: predicated region body
PF: predicated region fallthrough
CT: control target
= control target key end

     0   :  { %11 = vsyncpa [#allocation4], 0  ;;  %s1138_s0 = inlined_call_operand.hbm [shape: f32[4,32], index: 0, kind: input, shape index: {}]   ;;  %s1139_s1 = inlined_call_operand.hbm [shape: bf16[2,16,32], index: 1, kind: input, shape index: {}]   ;;  %s1140_s2 = inlined_call_operand.hbm [shape: bf16[32,64], index: 2, kind: input, shape index: {}]   ;;  %s1141_s3 = inlined_call_operand.vmem [shape: f32[1,64], index: 3, kind: input, shape index: {}]   ;;  %s1142_s4 = inlined_call_operand.hbm [shape: bf16[32,32], index: 4, kind: input, shape index: {}]   ;;  %s1143_s5 = inlined_call_operand.vmem [shape: f32[1,32], index: 5, kind: input, shape index: {}]   ;;  %s1144_s6 = inlined_call_operand.hbm [shape: f32[2,128], index: 6, kind: output, shape index: {}]  }
   0x1   :  { %12 = vsyncpa [#allocation7], 0 }
   0x2   :  { %13 = vsyncpa [#allocation10], 0  ;;  %s30_s23 = sshll.u32 %s1139_s1, 4  ;;  %s31_s23 = int_to_ptr.hbm [resolvable:$true] %s30_s23 }
   0x3   :  { %14 = vsyncpa [#allocation5], 0  ;;  %s962_s24 = smov [#allocation6]   ;;  %s20_s28 = sshll.u32 %s1138_s0, 4  ;;  %s21_s28 = int_to_ptr.hbm [resolvable:$true] %s20_s28 }
   0x4   :  { %s32_s25 = sshll.u32 %s962_s24, 4  ;;  %s963_s29 = smov 64   ;;  %s33_s25 = int_to_ptr.vmem [resolvable:$true] %s32_s25 }
   0x5   :  { %s964_s30 = smov 4   ;;  %s965_s7 = smov [#allocation3]  }
   0x6   :  { %38 = dma.hbm_to_vmem [thread:$0]  %s31_s23, 256, %s33_s25, [#allocation7], %s963_s29, %s963_s29, %s964_s30  }
   0x7   :  { %s22_s8 = sshll.u32 %s965_s7, 4  ;;  %s43_s1 = sshll.u32 %s1140_s2, 4  ;;  %s23_s8 = int_to_ptr.vmem [resolvable:$true] %s22_s8  ;;  %s44_s1 = int_to_ptr.hbm [resolvable:$true] %s43_s1 }
   0x8   :  { %25 = dma.hbm_to_vmem [thread:$0]  %s21_s28, 64, %s23_s8, [#allocation4]  }
   0x9   :  { %s58_s13 = sshll.u32 %s1142_s4, 4  ;;  %s966_s0 = smov [#allocation8]   ;;  %s59_s13 = int_to_ptr.hbm [resolvable:$true] %s58_s13 }
   0xa   :  { %s45_s14 = sshll.u32 %s966_s0, 4  ;;  %s967_s15 = smov [#allocation9]   ;;  %s46_s14 = int_to_ptr.vmem [resolvable:$true] %s45_s14 }
   0xb   :  { %51 = dma.hbm_to_vmem [thread:$0]  %s44_s1, 256, %s46_s14, [#allocation7], %s963_s29, %s963_s29, %s964_s30  }
   0xc   :  { %s60_s16 = sshll.u32 %s967_s15, 4  ;;  %s61_s16 = int_to_ptr.vmem [resolvable:$true] %s60_s16 }
   0xd   :  { %66 = dma.hbm_to_vmem [thread:$0]  %s59_s13, 256, %s61_s16, [#allocation10], %s963_s29, %s963_s29, %s964_s30  }
   0xe   :  { %954 = dma.done.wait [#allocation4], 64  }
   0xf   :  { %955 = vsyncadd [#allocation4], 4294967232 }
  0x10   :  { %956 = dma.done.wait [#allocation7], 512  }
  0x11   :  { %957 = vsyncadd [#allocation7], 4294966784 }
  0x12   :  { %958 = dma.done.wait [#allocation10], 256  }
  0x13   :  { %959 = vsyncadd [#allocation10], 4294967040  ;;  %v777_v0 = vld [vmem:[#allocation8 + $0x8] sm:$0xff]  ;;  %v776_v1 = vld [vmem:[#allocation8] sm:$0xff]  ;;  %vm120_vm0 = vcmask 261120   ;;  %s968_s2 = smov 120  }
  0x14   :  { %133 = vmatpush.bf16.msra.mxu0 %v777_v0  ;;  %v774_v2 = vld [vmem:[#allocation6] sm:$0xff]  ;;  %v775_v3 = vld [vmem:[#allocation6 + $0x8] sm:$0xff]  ;;  %v1037_v4 = vld [vmem:[#allocation3] sm:$0xf]  ;;  %vm158_vm1 = vcmask 64512   ;;  %s969_s18 = smov 112  }
  0x15   :  { %v151_v5 = vmul.f32 0.17677669, %v1037_v4  ;;  %v800_v10 = vld [vmem:[%s1141_s3] ss:$0 sm:$0xff]  ;;  %s970_s3 = smov 104   ;;  %s971_s19 = smov 96  }
  0x16   :  { %vm199_vm2 = vcmask 125952   ;;  %s972_s20 = smov 88   ;;  %s973_s21 = smov 80   ;;  %vm227_vm3 = vcmask 130048   ;;  %vm263_vm4 = vcmask 60416   ;;  %vm380_vm5 = vcmask 126016  }
  0x17   :  { %v152_v6 = vpack.c.bf16 %v151_v5, %v151_v5  ;;  %s974_s22 = smov 72   ;;  %s975_s23 = smov 8   ;;  %vm494_vm6 = vcmask 191616   ;;  %vm608_vm7 = vcmask 257216   ;;  %vm678_vm8 = vcmask 1047556  }
  0x18   :  { %134 = vmatpush.bf16.msra.mxu0 %v776_v1  ;;  %s976_s24 = smov 16   ;;  %s977_s25 = smov 24   ;;  %vm707_vm9 = vcmask 523264   ;;  %vm709_vm10 = vcmask 785408  }
  0x19   :  { %v267_v7 = vunpack.c.l.b16 %v152_v6  ;;  %s981_s28 = smov [#allocation11]   ;;  %s719_s9 = sshll.u32 %s1144_s6, 4  ;;  %s720_s9 = int_to_ptr.hbm [resolvable:$true] %s719_s9 }
  0x1a   :  { %s717_s30 = sshll.u32 %s981_s28, 4  ;;  %s718_s30 = int_to_ptr.vmem [resolvable:$true] %s717_s30 }
  0x1b   :  { %747 = vmatmul.msk.bf16.vlgmr.msra.gmra.mxu0 %vm120_vm0, %v774_v2  ;;  %v268_v8 = vpack.c.b16 %v267_v7, %v267_v7 }
  0x1d   :  { %269 = vrot.lane.b32.xlu1 %v268_v8, %s968_s2 }
  0x2b   :  { %748 = vmatmul.msk.bf16.gmra.mxu0 %vm120_vm0, %v775_v3 }
  0x8f   :  { %v270_v30 = vpop.permute.xlu1 %269 }
  0x98   :  { %v136_v9 = vpop.f32.mrf.mxu0 }
  0x99   :  { %v137_v11 = vadd.f32 %v800_v10, %v136_v9 }
  0x9b   :  { %v146_v13 = vpack.c.bf16 %v137_v11, %v137_v11 }
  0x9d   :  { %v155_v16 = vunpack.c.l.b16 %v146_v13 }
  0xa0   :  { %v138_v12 = vpop.f32.mrf.mxu0 }
  0xa1   :  { %v139_v14 = vadd.f32 %v800_v10, %v138_v12 }
  0xa3   :  { %v147_v15 = vpack.c.bf16 %v139_v14, %v139_v14 }
  0xa5   :  { %v156_v17 = vunpack.c.l.b16 %v147_v15 }
  0xa7   :  { %v1044_v18 = vpack.c.b16 %v156_v17, %v155_v16 }
  0xa8   :  { %v141_v19 = vpop.f32.mrf.mxu0 }
  0xa9   :  { %385 = vrot.lane.b32.xlu1 %v1044_v18, %s969_s18  ;;  %271 = vrot.lane.b32.xlu0 %v1044_v18, %s968_s2  ;;  %v163_v20 = vsel %vm158_vm1, %v1044_v18, 0  ;;  %v142_v21 = vadd.f32 %v800_v10, %v141_v19 }
  0xaa   :  { %172 = vmatpush.bf16.xpose.msra.mxu1 %v163_v20 }
  0xab   :  { %v148_v23 = vpack.c.bf16 %v142_v21, %v142_v21 }
  0xad   :  { %v180_v26 = vunpack.c.l.b16 %v148_v23 }
  0xb0   :  { %v143_v22 = vpop.f32.mrf.mxu0 }
  0xb1   :  { %v144_v24 = vadd.f32 %v800_v10, %v143_v22  ;;  %749 = vmatmul.msk.bf16.vlgmr.msra.gmra.mxu1 %vm158_vm1, %v152_v6 }
  0xb3   :  { %v149_v25 = vpack.c.bf16 %v144_v24, %v144_v24 }
  0xb5   :  { %v181_v27 = vunpack.c.l.b16 %v149_v25 }
  0xb7   :  { %v1052_v28 = vpack.c.b16 %v181_v27, %v180_v26 }
  0xb9   :  { %406 = vrot.lane.b32.xlu2 %v1052_v28, %s969_s18  ;;  %520 = vrot.lane.b32.xlu1 %v1052_v28, %s970_s3  ;;  %v184_v29 = vsel %vm158_vm1, %v1052_v28, 0 }
  0xba   :  { %292 = vrot.lane.b32.xlu0 %v1052_v28, %s968_s2  ;;  %193 = vmatpush.bf16.xpose.msra.mxu2 %v184_v29 }
  0xc1   :  { %383 = vrot.lane.b32.xlu2 %v268_v8, %s969_s18  ;;  %750 = vmatmul.msk.bf16.vlgmr.msra.gmra.mxu2 %vm158_vm1, %v152_v6 }
  0xc2   :  { %499 = vrot.lane.b32.xlu0 %v1044_v18, %s970_s3 }
  0xc9   :  { %497 = vrot.lane.b32.xlu2 %v268_v8, %s970_s3 }
  0xca   :  { %224 = vrot.lane.b32.xlu0 %v1044_v18, %s971_s19 }
  0xd1   :  { %244 = vrot.lane.b32.xlu2 %v1052_v28, %s971_s19 }
 0x113   :  { %v407_v35 = vpop.permute.xlu2 %406 }
 0x114   :  { %v409_v39 = vsel %vm158_vm1, %v407_v35, 0 }
 0x11b   :  { %v386_v31 = vpop.permute.xlu1 %385  ;;  %v272_v33 = vpop.permute.xlu0 %271 }
 0x11c   :  { %v391_v32 = vsel %vm158_vm1, %v386_v31, 0  ;;  %v277_v34 = vsel %vm158_vm1, %v272_v33, 0  ;;  %v384_v36 = vpop.permute.xlu2 %383 }
 0x11d   :  { %286 = vmatpush.bf16.xpose.msrb.mxu1 %v277_v34 }
 0x124   :  { %753 = vmatmul.msk.bf16.vlgmr.msrb.gmra.mxu1 %vm158_vm1, %v270_v30  ;;  %v498_v43 = vpop.permute.xlu2 %497 }
 0x125   :  { %400 = vmatpush.bf16.xpose.msra.mxu1 %v391_v32 }
 0x12b   :  { %v521_v42 = vpop.permute.xlu1 %520 }
 0x12c   :  { %v293_v37 = vpop.permute.xlu0 %292  ;;  %v523_v45 = vsel %vm158_vm1, %v521_v42, 0  ;;  %v245_v49 = vpop.permute.xlu2 %244 }
 0x12d   :  { %v295_v38 = vsel %vm158_vm1, %v293_v37, 0 }
 0x12e   :  { %304 = vmatpush.bf16.xpose.msrb.mxu2 %v295_v38  ;;  %v174_v40 = vpop.f32.mrf.mxu1 }
 0x12f   :  { %v200_v41 = vsel %vm199_vm2, %v174_v40, -inf }
 0x130   :  { %201 = vmax.xlane.f32.xlu0 %v200_v41 }
 0x134   :  { %v500_v44 = vpop.permute.xlu0 %499  ;;  %757 = vmatmul.msk.bf16.vlgmr.msra.gmra.mxu1 %vm158_vm1, %v384_v36 }
 0x135   :  { %v505_v46 = vsel %vm158_vm1, %v500_v44, 0  ;;  %754 = vmatmul.msk.bf16.vlgmr.msrb.gmra.mxu2 %vm158_vm1, %v270_v30 }
 0x136   :  { %418 = vmatpush.bf16.xpose.msra.mxu2 %v409_v39  ;;  %514 = vmatpush.bf16.xpose.msrb.mxu1 %v505_v46  ;;  %v176_v47 = vpop.f32.mrf.mxu1 }
 0x13c   :  { %v225_v48 = vpop.permute.xlu0 %224 }
 0x13d   :  { %238 = vmatpush.bf16.msra.mxu3 %v225_v48 }
 0x13e   :  { %532 = vmatpush.bf16.xpose.msrb.mxu2 %v523_v45 }
 0x141   :  { %257 = vmatpush.bf16.msrb.mxu3 %v245_v49 }
 0x144   :  { %v195_v50 = vpop.f32.mrf.mxu2  ;;  %761 = vmatmul.msk.bf16.vlgmr.msrb.gmra.mxu1 %vm158_vm1, %v498_v43 }
 0x145   :  { %758 = vmatmul.msk.bf16.vlgmr.msra.gmra.mxu2 %vm158_vm1, %v384_v36  ;;  %v203_v51 = vsel %vm199_vm2, %v195_v50, -inf }
 0x146   :  { %204 = vmax.xlane.f32.xlu1 %v203_v51 }
 0x14c   :  { %v197_v52 = vpop.f32.mrf.mxu2 }
 0x155   :  { %762 = vmatmul.msk.bf16.vlgmr.msrb.gmra.mxu2 %vm158_vm1, %v498_v43 }
 0x15f   :  { %334 = vrot.lane.b32.xlu1 %v1044_v18, %s972_s20 }
 0x1a1   :  { %v288_v53 = vpop.f32.mrf.mxu1 }
 0x1a2   :  { %v310_v55 = vsel %vm199_vm2, %v288_v53, -inf }
 0x1a3   :  { %v202_v54 = vpop.xlane.xlu0 %201  ;;  %311 = vmax.xlane.f32.xlu2 %v310_v55 }
 0x1a4   :  { %v206_v56 = vsub.f32 %v174_v40, %v202_v54 }
 0x1a6   :  { %v208_v57 = vmul.f32 1.442695, %v206_v56 }
 0x1a8   :  { %802 = vpow2.f32 %v208_v57 }
 0x1a9   :  { %v290_v58 = vpop.f32.mrf.mxu1 }
 0x1ae   :  { %v803_v59 = vpop.eup %802 }
 0x1af   :  { %v212_v60 = vsel %vm199_vm2, %v803_v59, 0.0 }
 0x1b0   :  { %213 = vadd.xlane.f32.xlu1 %v212_v60 }
 0x1b1   :  { %v402_v61 = vpop.f32.mrf.mxu1 }
 0x1b2   :  { %v424_v62 = vsel %vm199_vm2, %v402_v61, -inf }
 0x1b3   :  { %425 = vmax.xlane.f32.xlu0 %v424_v62 }
 0x1b8   :  { %v306_v63 = vpop.f32.mrf.mxu2 }
 0x1b9   :  { %v205_v0 = vpop.xlane.xlu1 %204  ;;  %v313_v1 = vsel %vm199_vm2, %v306_v63, -inf  ;;  %v404_v3 = vpop.f32.mrf.mxu1 }
 0x1ba   :  { %v207_v2 = vsub.f32 %v195_v50, %v205_v0  ;;  %314 = vmax.xlane.f32.xlu2 %v313_v1 }
 0x1bc   :  { %v210_v5 = vmul.f32 1.442695, %v207_v2 }
 0x1be   :  { %804 = vpow2.f32 %v210_v5 }
 0x1c0   :  { %v308_v6 = vpop.f32.mrf.mxu2 }
 0x1c1   :  { %v516_v7 = vpop.f32.mrf.mxu1 }
 0x1c2   :  { %v538_v8 = vsel %vm199_vm2, %v516_v7, -inf }
 0x1c3   :  { %539 = vmax.xlane.f32.xlu1 %v538_v8 }
 0x1c4   :  { %v805_v9 = vpop.eup %804 }
 0x1c5   :  { %v215_v10 = vsel %vm199_vm2, %v805_v9, 0.0 }
 0x1c6   :  { %216 = vadd.xlane.f32.xlu2 %v215_v10 }
 0x1c7   :  { %448 = vrot.lane.b32.xlu0 %v1044_v18, %s973_s21 }
 0x1c8   :  { %v420_v11 = vpop.f32.mrf.mxu2 }
 0x1c9   :  { %v518_v12 = vpop.f32.mrf.mxu1  ;;  %v427_v13 = vsel %vm199_vm2, %v420_v11, -inf }
 0x1ce   :  { %428 = vmax.xlane.f32.xlu2 %v427_v13 }
 0x1d0   :  { %v422_v14 = vpop.f32.mrf.mxu2 }
 0x1d1   :  { %v335_v22 = vpop.permute.xlu1 %334 }
 0x1d8   :  { %v1091_v15 = vpop.f32.mrf.mxu2 }
 0x1d9   :  { %v541_v16 = vsel %vm199_vm2, %v1091_v15, -inf }
 0x1da   :  { %542 = vmax.xlane.f32.xlu1 %v541_v16 }
 0x1e0   :  { %v536_v17 = vpop.f32.mrf.mxu2 }
 0x1e6   :  { %353 = vrot.lane.b32.xlu2 %v1052_v28, %s972_s20 }
 0x216   :  { %v312_v19 = vpop.xlane.xlu2 %311 }
 0x217   :  { %v316_v20 = vsub.f32 %v288_v53, %v312_v19 }
 0x219   :  { %v318_v21 = vmul.f32 1.442695, %v316_v20 }
 0x21b   :  { %806 = vpow2.f32 %v318_v21 }
 0x221   :  { %v1097_v23 = vpop.eup %806 }
 0x222   :  { %v322_v25 = vsel %vm199_vm2, %v1097_v23, 0.0 }
 0x223   :  { %v214_v24 = vpop.xlane.xlu1 %213  ;;  %323 = vadd.xlane.f32.xlu1 %v322_v25 }
 0x224   :  { %808 = vrcp.f32 %v214_v24 }
 0x226   :  { %v426_v26 = vpop.xlane.xlu0 %425 }
 0x227   :  { %v430_v27 = vsub.f32 %v402_v61, %v426_v26 }
 0x229   :  { %v432_v30 = vmul.f32 1.442695, %v430_v27 }
 0x22a   :  { %v809_v29 = vpop.eup %808 }
 0x22b   :  { %v220_v31 = vmul.f32 %v809_v29, %v803_v59  ;;  %810 = vpow2.f32 %v432_v30 }
 0x22d   :  { %v315_v32 = vpop.xlane.xlu2 %314  ;;  %v222_v33 = vpack.c.bf16 %v220_v31, %v220_v31 }
 0x22e   :  { %v317_v34 = vsub.f32 %v306_v63, %v315_v32 }
 0x22f   :  { %751 = vmatmul.msk.bf16.vlgmr.msra.gmra.mxu3 %vm227_vm3, %v222_v33 }
 0x230   :  { %v320_v35 = vmul.f32 1.442695, %v317_v34  ;;  %347 = vmatpush.bf16.msra.mxu3 %v335_v22 }
 0x231   :  { %v811_v36 = vpop.eup %810 }
 0x232   :  { %812 = vpow2.f32 %v320_v35  ;;  %v436_v37 = vsel %vm199_vm2, %v811_v36, 0.0 }
 0x233   :  { %437 = vadd.xlane.f32.xlu2 %v436_v37 }
 0x236   :  { %v540_v38 = vpop.xlane.xlu1 %539 }
 0x237   :  { %v544_v40 = vsub.f32 %v516_v7, %v540_v38 }
 0x238   :  { %v813_v39 = vpop.eup %812 }
 0x239   :  { %v217_v41 = vpop.xlane.xlu2 %216  ;;  %v325_v42 = vsel %vm199_vm2, %v813_v39, 0.0  ;;  %v546_v43 = vmul.f32 1.442695, %v544_v40  ;;  %v449_v52 = vpop.permute.xlu0 %448 }
 0x23a   :  { %814 = vrcp.f32 %v217_v41  ;;  %326 = vadd.xlane.f32.xlu0 %v325_v42 }
 0x23b   :  { %816 = vpow2.f32 %v546_v43 }
 0x240   :  { %v815_v44 = vpop.eup %814 }
 0x241   :  { %v221_v45 = vmul.f32 %v815_v44, %v805_v9  ;;  %v429_v46 = vpop.xlane.xlu2 %428  ;;  %v1104_v47 = vpop.eup %816 }
 0x242   :  { %v431_v48 = vsub.f32 %v420_v11, %v429_v46  ;;  %v550_v49 = vsel %vm199_vm2, %v1104_v47, 0.0  ;;  %v778_v46 = vld [vmem:[#allocation9] sm:$0xff] }
 0x243   :  { %v223_v50 = vpack.c.bf16 %v221_v45, %v221_v45  ;;  %551 = vadd.xlane.f32.xlu2 %v550_v49  ;;  %v779_v45 = vld [vmem:[#allocation9 + $0x8] sm:$0xff] }
 0x244   :  { %v434_v51 = vmul.f32 1.442695, %v431_v48  ;;  %655 = vmatpush.bf16.msra.mxu1 %v779_v45 }
 0x245   :  { %752 = vmatmul.msk.bf16.vlgmr.msrb.gmra.mxu3 %vm227_vm3, %v223_v50 }
 0x246   :  { %818 = vpow2.f32 %v434_v51  ;;  %461 = vmatpush.bf16.msrb.mxu3 %v449_v52 }
 0x248   :  { %656 = vmatpush.bf16.msra.mxu1 %v778_v46 }
 0x249   :  { %v354_v53 = vpop.permute.xlu2 %353 }
 0x24a   :  { %366 = vmatpush.bf16.msrb.mxu0 %v354_v53 }
 0x24c   :  { %v819_v54 = vpop.eup %818 }
 0x24d   :  { %v439_v55 = vsel %vm199_vm2, %v819_v54, 0.0  ;;  %v543_v56 = vpop.xlane.xlu1 %542 }
 0x24e   :  { %467 = vrot.lane.b32.xlu0 %v1052_v28, %s973_s21  ;;  %440 = vadd.xlane.f32.xlu1 %v439_v55  ;;  %v545_v57 = vsub.f32 %v1091_v15, %v543_v56  ;;  %v801_v55 = vld [vmem:[%s1143_s5] ss:$0 sm:$0xff]  ;;  %s980_s5 = smov 32  }
 0x250   :  { %v548_v58 = vmul.f32 1.442695, %v545_v57 }
 0x252   :  { %820 = vpow2.f32 %v548_v58  ;;  %v978_v58 = vmov 1983009808  }
 0x258   :  { %v821_v59 = vpop.eup %820 }
 0x259   :  { %v553_v60 = vsel %vm199_vm2, %v821_v59, 0.0 }
 0x25b   :  { %581 = vrot.lane.b32.xlu2 %v1052_v28, %s974_s22 }
 0x267   :  { %562 = vrot.lane.b32.xlu1 %v1044_v18, %s974_s22 }
 0x278   :  { %554 = vadd.xlane.f32.xlu0 %v553_v60 }
 0x296   :  { %v324_v61 = vpop.xlane.xlu1 %323 }
 0x297   :  { %822 = vrcp.f32 %v324_v61 }
 0x29d   :  { %v823_v62 = vpop.eup %822 }
 0x29e   :  { %v330_v63 = vmul.f32 %v823_v62, %v1097_v23 }
 0x2a0   :  { %v332_v0 = vpack.c.bf16 %v330_v63, %v330_v63 }
 0x2a2   :  { %755 = vmatmul.msk.bf16.vlgmr.msra.gmra.mxu3 %vm227_vm3, %v332_v0 }
 0x2a6   :  { %v438_v28 = vpop.xlane.xlu2 %437 }
 0x2a7   :  { %824 = vrcp.f32 %v438_v28 }
 0x2ad   :  { %v327_v1 = vpop.xlane.xlu0 %326  ;;  %v825_v2 = vpop.eup %824 }
 0x2ae   :  { %826 = vrcp.f32 %v327_v1  ;;  %v444_v18 = vmul.f32 %v825_v2, %v811_v36 }
 0x2b0   :  { %v446_v3 = vpack.c.bf16 %v444_v18, %v444_v18 }
 0x2b2   :  { %v240_v5 = vpop.f32.mrf.mxu3  ;;  %759 = vmatmul.msk.bf16.vlgmr.msrb.gmra.mxu3 %vm227_vm3, %v446_v3 }
 0x2b3   :  { %264 = vst.msk [vmem:[#allocation2] sm:$0xf] %vm263_vm4, %v240_v5 }
 0x2b4   :  { %v827_v6 = vpop.eup %826 }
 0x2b5   :  { %v331_v7 = vmul.f32 %v827_v6, %v813_v39 }
 0x2b6   :  { %v552_v8 = vpop.xlane.xlu2 %551 }
 0x2b7   :  { %v333_v9 = vpack.c.bf16 %v331_v7, %v331_v7 }
 0x2b9   :  { %756 = vmatmul.msk.bf16.vlgmr.msrb.gmra.mxu0 %vm227_vm3, %v333_v9 }
 0x2ba   :  { %v242_v10 = vpop.f32.mrf.mxu3 }
 0x2be   :  { %v582_v12 = vpop.permute.xlu2 %581 }
 0x2c0   :  { %v468_v11 = vpop.permute.xlu0 %467 }
 0x2c1   :  { %480 = vmatpush.bf16.msra.mxu0 %v468_v11  ;;  %v441_v13 = vpop.xlane.xlu1 %440 }
 0x2c2   :  { %828 = vrcp.f32 %v441_v13 }
 0x2c3   :  { %830 = vrcp.f32 %v552_v8 }
 0x2c5   :  { %594 = vmatpush.bf16.msrb.mxu0 %v582_v12 }
 0x2c8   :  { %v829_v14 = vpop.eup %828  ;;  %v259_v15 = vpop.f32.mrf.mxu3 }
 0x2c9   :  { %v445_v16 = vmul.f32 %v829_v14, %v819_v54  ;;  %265 = vst.msk [vmem:[#allocation2 + $0x4] sm:$0xf] %vm263_vm4, %v259_v15  ;;  %v831_v20 = vpop.eup %830 }
 0x2ca   :  { %v558_v21 = vmul.f32 %v831_v20, %v1104_v47 }
 0x2cb   :  { %v447_v17 = vpack.c.bf16 %v445_v16, %v445_v16 }
 0x2cc   :  { %v560_v23 = vpack.c.bf16 %v558_v21, %v558_v21 }
 0x2cd   :  { %760 = vmatmul.msk.bf16.vlgmr.msra.gmra.mxu0 %vm227_vm3, %v447_v17 }
 0x2d0   :  { %v261_v19 = vpop.f32.mrf.mxu3 }
 0x2d9   :  { %v563_v22 = vpop.permute.xlu1 %562 }
 0x2da   :  { %575 = vmatpush.bf16.msra.mxu3 %v563_v22 }
 0x2dd   :  { %763 = vmatmul.msk.bf16.vlgmr.msra.gmra.mxu3 %vm227_vm3, %v560_v23 }
 0x2eb   :  { %v555_v24 = vpop.xlane.xlu0 %554 }
 0x2ec   :  { %832 = vrcp.f32 %v555_v24 }
 0x2f2   :  { %v833_v25 = vpop.eup %832 }
 0x2f3   :  { %v559_v26 = vmul.f32 %v833_v25, %v821_v59  ;;  %v669_v59 = vunpack.c.l.s4 %v978_v58 }
 0x2f5   :  { %v561_v27 = vpack.c.bf16 %v559_v26, %v559_v26  ;;  %v670_v0 = vunpack.c.0.s8 %v669_v59 }
 0x2f7   :  { %764 = vmatmul.msk.bf16.vlgmr.msrb.gmra.mxu0 %vm227_vm3, %v561_v27 }
 0x325   :  { %v349_v29 = vpop.f32.mrf.mxu3 }
 0x326   :  { %374 = vrot.lane.b32.xlu1 %v349_v29, %s975_s23 }
 0x32d   :  { %v351_v30 = vpop.f32.mrf.mxu3 }
 0x335   :  { %v463_v32 = vpop.f32.mrf.mxu3 }
 0x336   :  { %v368_v31 = vpop.f32.mrf.mxu0  ;;  %488 = vrot.lane.b32.xlu1 %v463_v32, %s976_s24 }
 0x337   :  { %376 = vrot.lane.b32.xlu2 %v368_v31, %s975_s23 }
 0x33d   :  { %v465_v34 = vpop.f32.mrf.mxu3 }
 0x33e   :  { %v370_v33 = vpop.f32.mrf.mxu0 }
 0x34a   :  { %v482_v35 = vpop.f32.mrf.mxu0 }
 0x34b   :  { %490 = vrot.lane.b32.xlu2 %v482_v35, %s976_s24 }
 0x352   :  { %v484_v36 = vpop.f32.mrf.mxu0 }
 0x360   :  { %v577_v37 = vpop.f32.mrf.mxu3 }
 0x361   :  { %602 = vrot.lane.b32.xlu0 %v577_v37, %s977_s25 }
 0x368   :  { %v579_v38 = vpop.f32.mrf.mxu3 }
 0x374   :  { %v596_v39 = vpop.f32.mrf.mxu0 }
 0x375   :  { %604 = vrot.lane.b32.xlu1 %v596_v39, %s977_s25 }
 0x37c   :  { %v598_v40 = vpop.f32.mrf.mxu0 }
 0x391   :  { %v377_v41 = vpop.permute.xlu2 %376 }
 0x392   :  { %382 = vst.msk [vmem:[#allocation2 + $0x4] sm:$0xf] %vm380_vm5, %v377_v41 }
 0x398   :  { %v375_v42 = vpop.permute.xlu1 %374 }
 0x399   :  { %381 = vst.msk [vmem:[#allocation2] sm:$0xf] %vm380_vm5, %v375_v42 }
 0x3a5   :  { %v491_v43 = vpop.permute.xlu2 %490 }
 0x3a6   :  { %496 = vst.msk [vmem:[#allocation2 + $0x4] sm:$0xf] %vm494_vm6, %v491_v43 }
 0x3a8   :  { %v489_v44 = vpop.permute.xlu1 %488 }
 0x3a9   :  { %495 = vst.msk [vmem:[#allocation2] sm:$0xf] %vm494_vm6, %v489_v44 }
 0x3d3   :  { %v603_v47 = vpop.permute.xlu0 %602 }
 0x3d4   :  { %609 = vst.msk [vmem:[#allocation2] sm:$0xf] %vm608_vm7, %v603_v47 }
 0x3db   :  { %v611_v48 = vld [vmem:[#allocation2] sm:$0xf] }
 0x3dc   :  { %v613_v49 = vadd.f32 %v611_v48, %v1037_v4 }
 0x3de   :  { %v615_v50 = vpack.c.bf16 %v613_v49, %v613_v49 }
 0x3e0   :  { %625 = vst [vmem:[#allocation1] ss:$4 sm:$0xff] %v615_v50 }
 0x3e7   :  { %v605_v51 = vpop.permute.xlu1 %604 }
 0x3e8   :  { %610 = vst.msk [vmem:[#allocation2 + $0x4] sm:$0xf] %vm608_vm7, %v605_v51 }
 0x3ef   :  { %v612_v52 = vld [vmem:[#allocation2 + $0x4] sm:$0xf] }
 0x3f0   :  { %v614_v53 = vadd.f32 %v612_v52, %v1037_v4  ;;  %v979_v4 = vmov 1934713408  }
 0x3f1   :  { %v683_v28 = vunpack.c.l.s4 %v979_v4 }
 0x3f2   :  { %v616_v54 = vpack.c.bf16 %v614_v53, %v614_v53 }
 0x3f3   :  { %v684_v6 = vunpack.c.0.s8 %v683_v28 }
 0x3f4   :  { %628 = vst [vmem:[#allocation1 + $0x1] ss:$4 sm:$0xff] %v616_v54 }
 0x3fb   :  { %v629_v56 = vld.sshfl [vmem:[#allocation1] sm:$0xff pattern:$0x73625140] }
 0x3fc   :  { %642 = vst [vmem:[#allocation1] ss:$2 sm:$0xff] %v801_v55  ;;  %773 = vmatmul.msk.bf16.vlgmr.msra.gmra.mxu1 %vm120_vm0, %v629_v56 }
 0x3fd   :  { %644 = vst [vmem:[#allocation1 + $0x1] ss:$2 sm:$0xff] %v801_v55 }
 0x404   :  { %v645_v57 = vld.sshfl [vmem:[#allocation1] sm:$0xff pattern:$0x75316420] }
 0x479   :  { %v658_v60 = vpop.f32.mrf.mxu1 }
 0x47a   :  { %v659_v61 = vadd.f32 %v658_v60, %v645_v57 }
 0x47c   :  { %v663_v62 = vrot.slane %v659_v61, 4  ;;  %v665_v63 = vmax.f32 %v659_v61, 0.0 }
 0x47e   :  { %v666_v1 = vmax.f32 %v663_v62, 0.0  ;;  %v667_v2 = vadd.f32 %v665_v63, %v613_v49 }
 0x480   :  { %v671_v18 = vperm.slane %v667_v2, %v670_v0  ;;  %v672_v3 = vadd.f32 %v666_v1, %v614_v53 }
 0x481   :  { %v660_v5 = vpop.f32.mrf.mxu1 }
 0x482   :  { %v676_v7 = vperm.slane %v672_v3, %v670_v0  ;;  %v680_v8 = vrot.slane %v671_v18, 4 }
 0x484   :  { %v681_v9 = vsel %vm678_vm8, %v676_v7, %v680_v8  ;;  %v677_v10 = vrot.slane %v676_v7, 4 }
 0x485   :  { %v689_v11 = vperm.slane %v681_v9, %v684_v6 }
 0x486   :  { %v679_v12 = vsel %vm678_vm8, %v677_v10, %v671_v18 }
 0x487   :  { %699 = vrot.lane.b32.xlu1 %v689_v11, %s963_s29  ;;  %v685_v13 = vperm.slane %v679_v12, %v684_v6  ;;  %v692_v16 = vrot.slane %v689_v11, 4 }
 0x489   :  { %v690_v14 = vrot.slane %v685_v13, 4  ;;  %v693_v17 = vsel %vm678_vm8, 0.0, %v692_v16 }
 0x48b   :  { %v691_v15 = vsel %vm678_vm8, 0.0, %v690_v14 }
 0x48c   :  { %695 = vrot.lane.b32.xlu2 %v691_v15, %s980_s5 }
 0x494   :  { %703 = vrot.lane.b32.xlu2 %v693_v17, %s971_s19 }
 0x4e6   :  { %v696_v19 = vpop.permute.xlu2 %695 }
 0x4e7   :  { %v706_v20 = vsel %vm120_vm0, %v685_v13, %v696_v19 }
 0x4ee   :  { %v704_v22 = vpop.permute.xlu2 %703 }
 0x4f9   :  { %v700_v21 = vpop.permute.xlu1 %699 }
 0x4fa   :  { %v708_v23 = vsel %vm707_vm9, %v706_v20, %v700_v21 }
 0x4fb   :  { %v710_v24 = vsel %vm709_vm10, %v708_v23, %v704_v22 }
 0x4fc   :  { %711 = vst [vmem:[#allocation11] sm:$0x3] %v710_v24 }
 0x4fd   :  { %722 = dma.vmem_to_hbm [thread:$0]  %s718_s30, 32, %s720_s9, [#allocation5]  }
 0x4fe   :  { %960 = dma.done.wait [#allocation5], 32  }
 0x4ff   :  { %961 = vsyncadd [#allocation5], 4294967264 }
 0x500   :  { %727 = vsyncpa [#allocation4], 1 }
 0x501   :  { %728 = vsyncpa [#allocation7], 1 }
 0x502   :  { %729 = vsyncpa [#allocation10], 1 }
 0x503   :  { %730 = vsyncpa [#allocation5], 1 }

</bundles_post_ra>
